<compile_context>
chip_gen: v6e
topology: v6e:2x2x1
jax: 0.10.0
libtpu: 0.0.40
codegen_flags: <defaults>
</compile_context>

<pallas_src>
import functools

import jax
import jax.numpy as jnp
from jax.experimental import pallas as pl
from jax.experimental.pallas import tpu as pltpu


def _gather_kernel(ids_ref, table_ref, out_ref, sem, *, n_tokens, tile_n, depth):
    """Gather up to `tile_n` table rows (HBM) into the output block (VMEM).

    ids_ref:   (N,) int32 in SMEM (scalar prefetch) -- all token ids
    table_ref: (V, D) in HBM (memory_space=pl.ANY)  -- embedding table
    out_ref:   (tile_n, D) VMEM output block for this grid step
    sem:       (depth,) DMA semaphores -- rotated row-copy pipeline
    """
    tile = pl.program_id(0)
    base = tile * tile_n
    # Valid rows in this tile (masks the ragged last tile; no host-side pad).
    rows = jnp.minimum(tile_n, n_tokens - base)
    vocab = table_ref.shape[0]

    def row_copy(i, slot):
        tok = ids_ref[base + i]
        # PyTorch nn.Embedding raises on out-of-range ids; clamp instead of
        # issuing an out-of-bounds HBM DMA.
        tok = jnp.clip(tok, 0, vocab - 1)
        return pltpu.make_async_copy(
            table_ref.at[pl.ds(tok, 1), :],   # (1, D) row in HBM
            out_ref.at[pl.ds(i, 1), :],       # (1, D) row in the VMEM out block
            sem.at[slot],
        )

    # Prime up to `depth` row DMAs.
    def prime(i, _):
        row_copy(i, i % depth).start()
        return 0

    jax.lax.fori_loop(0, jnp.minimum(depth, rows), prime, 0)

    # Steady state: wait for row i, then reuse its semaphore slot to start
    # row i + depth. Keeps ~`depth` row copies in flight.
    def body(i, _):
        slot = i % depth
        row_copy(i, slot).wait()

        @pl.when(i + depth < rows)
        def _():
            row_copy(i + depth, slot).start()

        return 0

    jax.lax.fori_loop(0, rows, body, 0)


def vocab_embedding(x, table, *, tile_n=128, prefetch_depth=8, use_kernel=None):
    """x: (B, S) int token ids; table: (V, D) -> (B, S, D) embeddings."""
    b, s = x.shape
    v, d = table.shape
    n = b * s

    if use_kernel is None:
        # Tiny lookups: the pallas_call launch dominates -- let XLA gather.
        use_kernel = (n * d) >= (1 << 16)
    if not use_kernel:
        return table[x]

    ids = x.reshape(n).astype(jnp.int32)

    # Token tile: multiple of 8 sublanes, no larger than the 8-rounded token
    # count (so the demo-sized problem does not allocate a 128-row block).
    tile = max(8, min(int(tile_n), pl.cdiv(n, 8) * 8))
    tile = pl.cdiv(tile, 8) * 8
    num_tiles = pl.cdiv(n, tile)
    n_pad = num_tiles * tile
    depth = max(1, min(int(prefetch_depth), tile))

    # VMEM use is just the (double-buffered) output tile; the table never
    # leaves HBM, so this also fits v7x's 64 MiB VMEM.
    out_block_bytes = tile * d * table.dtype.itemsize
    vmem_limit = max(16 << 20, 2 * out_block_bytes + (4 << 20))

    kernel = functools.partial(
        _gather_kernel, n_tokens=n, tile_n=tile, depth=depth
    )

    out = pl.pallas_call(
        kernel,
        out_shape=jax.ShapeDtypeStruct((n_pad, d), table.dtype),
        grid_spec=pltpu.PrefetchScalarGridSpec(
            num_scalar_prefetch=1,                      # ids -> SMEM
            grid=(num_tiles,),
            in_specs=[
                pl.BlockSpec(memory_space=pl.ANY),      # table stays in HBM
            ],
            out_specs=pl.BlockSpec((tile, d), lambda i, ids_ref: (i, 0)),
            scratch_shapes=[pltpu.SemaphoreType.DMA((depth,))],
        ),
        compiler_params=pltpu.CompilerParams(
            dimension_semantics=("parallel",),          # megacore-shards tokens
            vmem_limit_bytes=vmem_limit,
        ),
    )(ids, table)

    return out[:n].reshape(b, s, d)


if __name__ == "__main__":
    key = jax.random.PRNGKey(0)
    k_tab, k_ids = jax.random.split(key)

    vocab_size = 512
    embedding_dim = 128   # lane-dense output last dim (multiple of 128)
    batch, seq = 2, 8

    # Deterministic synthetic embedding table (stands in for Vocab.get_embedding).
    # TODO(synk): Vocab may specify a padding_idx whose row is zero-initialized;
    # not modeled here since vocab_params are synthetic.
    table = (
        jax.random.normal(k_tab, (vocab_size, embedding_dim), jnp.float32) * 0.02
    )
    x = jax.random.randint(k_ids, (batch, seq), 0, vocab_size, dtype=jnp.int32)

    # Force the Pallas path so the kernel is exercised even at demo size.
    out = vocab_embedding(x, table, use_kernel=True)
    jax.block_until_ready(out)

    # Correctness check against plain JAX gather (== nn.Embedding forward).
    ref = table[x]
    assert out.shape == (batch, seq, embedding_dim)
    assert jnp.allclose(out, ref), "mismatch vs reference gather"

    print("KERNEL_OK")
</pallas_src>

<mosaic_0001>
module attributes {stable_mosaic.version = 11 : i64} {
  func.func @_gather_kernel(%arg0: i32, %arg1: memref<16xi32, #tpu.memory_space<smem>>, %arg2: memref<512x128xf32, #tpu.memory_space<any>>, %arg3: memref<16x128xf32, #tpu.memory_space<vmem>>, %arg4: memref<8x!tpu.dma_semaphore, #tpu.memory_space<semaphore_mem>>) attributes {dimension_semantics = [#tpu.dimension_semantics<parallel>], iteration_bounds = array<i64: 1>, scalar_prefetch = 1 : i64, scratch_operands = 1 : i64, tpu.core_type = #tpu.core_type<tc>, window_params = [{}, {transform_indices = @transform_1, window_bounds = array<i64: 16, 128>}]} {
    %c16_i32 = arith.constant 16 : i32
    %0 = arith.muli %arg0, %c16_i32 : i32
    %c16_i32_0 = arith.constant 16 : i32
    %1 = arith.subi %c16_i32_0, %0 : i32
    %c16_i32_1 = arith.constant 16 : i32
    %2 = arith.minsi %c16_i32_1, %1 : i32
    %c8_i32 = arith.constant 8 : i32
    %3 = arith.minsi %c8_i32, %2 : i32
    %c0_i32 = arith.constant 0 : i32
    %c0_i32_2 = arith.constant 0 : i32
    %4 = arith.subi %3, %c0_i32 : i32
    %5 = arith.addi %c0_i32, %4 : i32
    %c1_i32 = arith.constant 1 : i32
    %6 = scf.for %arg5 = %c0_i32 to %5 step %c1_i32 iter_args(%arg6 = %c0_i32_2) -> (i32)  : i32 {
      %c8_i32_6 = arith.constant 8 : i32
      %c0_i32_7 = arith.constant 0 : i32
      %10 = arith.cmpi eq, %c8_i32_6, %c0_i32_7 : i32
      %c1_i32_8 = arith.constant 1 : i32
      %11 = arith.select %10, %c1_i32_8, %c8_i32_6 : i32
      %12 = arith.remsi %arg5, %11 : i32
      %c0_i32_9 = arith.constant 0 : i32
      %13 = arith.cmpi ne, %12, %c0_i32_9 : i32
      %c0_i32_10 = arith.constant 0 : i32
      %14 = arith.cmpi slt, %12, %c0_i32_10 : i32
      %c0_i32_11 = arith.constant 0 : i32
      %15 = arith.cmpi slt, %11, %c0_i32_11 : i32
      %16 = arith.xori %14, %15 : i1
      %17 = arith.andi %16, %13 : i1
      %18 = arith.addi %12, %11 : i32
      %19 = arith.select %17, %18, %12 : i32
      %20 = arith.addi %0, %arg5 : i32
      %21 = arith.index_cast %20 : i32 to index
      %22 = memref.load %arg1[%21] : memref<16xi32, #tpu.memory_space<smem>>
      %c0_i32_12 = arith.constant 0 : i32
      %c511_i32 = arith.constant 511 : i32
      %23 = arith.maxsi %c0_i32_12, %22 : i32
      %24 = arith.minsi %c511_i32, %23 : i32
      %c0_i32_13 = arith.constant 0 : i32
      %25 = tpu.memref_slice %arg2[%24, %c0_i32_13] : memref<512x128xf32, #tpu.memory_space<any>> -> memref<1x128xf32, #tpu.memory_space<any>>
      %c0_i32_14 = arith.constant 0 : i32
      %26 = tpu.memref_slice %arg3[%arg5, %c0_i32_14] : memref<16x128xf32, #tpu.memory_space<vmem>> -> memref<1x128xf32, #tpu.memory_space<vmem>>
      %27 = tpu.memref_slice %arg4[%19] : memref<8x!tpu.dma_semaphore, #tpu.memory_space<semaphore_mem>> -> memref<1x!tpu.dma_semaphore, #tpu.memory_space<semaphore_mem>>
      %28 = tpu.memref_squeeze %27 : memref<1x!tpu.dma_semaphore, #tpu.memory_space<semaphore_mem>> -> memref<!tpu.dma_semaphore, #tpu.memory_space<semaphore_mem>>
      tpu.enqueue_dma source(%25 : memref<1x128xf32, #tpu.memory_space<any>>) target(%26 : memref<1x128xf32, #tpu.memory_space<vmem>>) target_semaphore(%28 : memref<!tpu.dma_semaphore, #tpu.memory_space<semaphore_mem>>)
      %c0_i32_15 = arith.constant 0 : i32
      scf.yield %c0_i32_15 : i32
    }
    %c0_i32_3 = arith.constant 0 : i32
    %c0_i32_4 = arith.constant 0 : i32
    %7 = arith.subi %2, %c0_i32_3 : i32
    %8 = arith.addi %c0_i32_3, %7 : i32
    %c1_i32_5 = arith.constant 1 : i32
    %9 = scf.for %arg5 = %c0_i32_3 to %8 step %c1_i32_5 iter_args(%arg6 = %c0_i32_4) -> (i32)  : i32 {
      %c8_i32_6 = arith.constant 8 : i32
      %c0_i32_7 = arith.constant 0 : i32
      %10 = arith.cmpi eq, %c8_i32_6, %c0_i32_7 : i32
      %c1_i32_8 = arith.constant 1 : i32
      %11 = arith.select %10, %c1_i32_8, %c8_i32_6 : i32
      %12 = arith.remsi %arg5, %11 : i32
      %c0_i32_9 = arith.constant 0 : i32
      %13 = arith.cmpi ne, %12, %c0_i32_9 : i32
      %c0_i32_10 = arith.constant 0 : i32
      %14 = arith.cmpi slt, %12, %c0_i32_10 : i32
      %c0_i32_11 = arith.constant 0 : i32
      %15 = arith.cmpi slt, %11, %c0_i32_11 : i32
      %16 = arith.xori %14, %15 : i1
      %17 = arith.andi %16, %13 : i1
      %18 = arith.addi %12, %11 : i32
      %19 = arith.select %17, %18, %12 : i32
      %20 = arith.addi %0, %arg5 : i32
      %21 = arith.index_cast %20 : i32 to index
      %22 = memref.load %arg1[%21] : memref<16xi32, #tpu.memory_space<smem>>
      %c0_i32_12 = arith.constant 0 : i32
      %c511_i32 = arith.constant 511 : i32
      %23 = arith.maxsi %c0_i32_12, %22 : i32
      %24 = arith.minsi %c511_i32, %23 : i32
      %c0_i32_13 = arith.constant 0 : i32
      %25 = tpu.memref_slice %arg2[%24, %c0_i32_13] : memref<512x128xf32, #tpu.memory_space<any>> -> memref<1x128xf32, #tpu.memory_space<any>>
      %c0_i32_14 = arith.constant 0 : i32
      %26 = tpu.memref_slice %arg3[%arg5, %c0_i32_14] : memref<16x128xf32, #tpu.memory_space<vmem>> -> memref<1x128xf32, #tpu.memory_space<vmem>>
      %27 = tpu.memref_slice %arg4[%19] : memref<8x!tpu.dma_semaphore, #tpu.memory_space<semaphore_mem>> -> memref<1x!tpu.dma_semaphore, #tpu.memory_space<semaphore_mem>>
      %28 = tpu.memref_squeeze %27 : memref<1x!tpu.dma_semaphore, #tpu.memory_space<semaphore_mem>> -> memref<!tpu.dma_semaphore, #tpu.memory_space<semaphore_mem>>
      tpu.wait_dma2 semaphore(%28 : memref<!tpu.dma_semaphore, #tpu.memory_space<semaphore_mem>>) src(%25 : memref<1x128xf32, #tpu.memory_space<any>>) dst(%26 : memref<1x128xf32, #tpu.memory_space<vmem>>)
      %c8_i32_15 = arith.constant 8 : i32
      %29 = arith.addi %arg5, %c8_i32_15 : i32
      %30 = arith.cmpi slt, %29, %2 : i32
      %31 = arith.extui %30 : i1 to i32
      %c0_i32_16 = arith.constant 0 : i32
      %32 = arith.cmpi ne, %31, %c0_i32_16 : i32
      scf.if %32 {
        %c8_i32_18 = arith.constant 8 : i32
        %33 = arith.addi %arg5, %c8_i32_18 : i32
        %34 = arith.addi %0, %33 : i32
        %35 = arith.index_cast %34 : i32 to index
        %36 = memref.load %arg1[%35] : memref<16xi32, #tpu.memory_space<smem>>
        %c0_i32_19 = arith.constant 0 : i32
        %c511_i32_20 = arith.constant 511 : i32
        %37 = arith.maxsi %c0_i32_19, %36 : i32
        %38 = arith.minsi %c511_i32_20, %37 : i32
        %c0_i32_21 = arith.constant 0 : i32
        %39 = tpu.memref_slice %arg2[%38, %c0_i32_21] : memref<512x128xf32, #tpu.memory_space<any>> -> memref<1x128xf32, #tpu.memory_space<any>>
        %c0_i32_22 = arith.constant 0 : i32
        %40 = tpu.memref_slice %arg3[%33, %c0_i32_22] : memref<16x128xf32, #tpu.memory_space<vmem>> -> memref<1x128xf32, #tpu.memory_space<vmem>>
        %41 = tpu.memref_slice %arg4[%19] : memref<8x!tpu.dma_semaphore, #tpu.memory_space<semaphore_mem>> -> memref<1x!tpu.dma_semaphore, #tpu.memory_space<semaphore_mem>>
        %42 = tpu.memref_squeeze %41 : memref<1x!tpu.dma_semaphore, #tpu.memory_space<semaphore_mem>> -> memref<!tpu.dma_semaphore, #tpu.memory_space<semaphore_mem>>
        tpu.enqueue_dma source(%39 : memref<1x128xf32, #tpu.memory_space<any>>) target(%40 : memref<1x128xf32, #tpu.memory_space<vmem>>) target_semaphore(%42 : memref<!tpu.dma_semaphore, #tpu.memory_space<semaphore_mem>>)
      } else {
      }
      %c0_i32_17 = arith.constant 0 : i32
      scf.yield %c0_i32_17 : i32
    }
    return
  }
  func.func @transform_1(%arg0: i32, %arg1: memref<16xi32, #tpu.memory_space<smem>>) -> (i32, i32) {
    %c0_i32 = arith.constant 0 : i32
    %c0_i32_0 = arith.constant 0 : i32
    return %arg0, %c0_i32 : i32, i32
  }
}

</mosaic_0001>

<bundles_post_ra>
// kernel: tpu_custom_call.1
= control target key start
LH: loop header
LB: loop body
LE: loop exit
PB: predicated region body
PF: predicated region fallthrough
CT: control target
= control target key end

     0   :  { %s350_s9 = smov [#allocation4]   ;;  %s459_s0 = inlined_call_operand.hbm [shape: s32[16], index: 0, kind: input, shape index: {}]   ;;  %s460_s1 = inlined_call_operand.hbm [shape: f32[512,128], index: 1, kind: input, shape index: {}]   ;;  %s461_s2 = inlined_call_operand.hbm [shape: f32[16,128], index: 2, kind: output, shape index: {}]  }
   0x1   :  { %8 = dma.hbm_to_smem %s459_s0, 16, %s350_s9, [#allocation3] }
   0x2   :  { %336 = dma.done.wait [#allocation3], 16 }
   0x3   :  { %337 = vsyncadd [#allocation3], 4294967280 }
   0x4   :  { %10 = sfence }
   0x5   :  { %11 = vsyncpa [#allocation6], 0  ;;  %s372_s12 = smov 0  }
   0x6 LB: > { %p24_p0 = scmp.lt.s32.totalorder %s344_s12, 0  ;;  %s25_s13 = ssub.s32 0, %s344_s12  ;;  %s344_s12 = sphi %s372_s12, %s21_s12  }
   0x7   : > { %s196_s14 = smin.u32 %s344_s12, %s25_s13  ;;  %s37_s0 = sld [smem:[#allocation4 + %s344_s12]] }
   0x8   : > { %s27_s15 = sand.u32 7, %s196_s14   ;;  %s44_s17 = scalar_lea.vmem [#allocation5], %s344_s12 }
   0x9   : > { %s28_s16 = ssub.s32 0, %s27_s15  ;;  %s53_s18 = sshll.u32 %s44_s17, 4  ;;  %s54_s18 = int_to_ptr.vmem [resolvable:$true] %s53_s18 }
   0xa   : > { %s464_s16 = smov (!%p24_p0, %s28_s16), %s27_s15  ;;  %s262_s28 = scalar_lea.hbm %s460_s1, 8192 }
   0xb   : > { %p198_p1 = scmp.lt.s32.totalorder %s464_s16, 0  ;;  %s34_s19 = sadd.s32 8, %s464_s16 }
   0xd   : > { %p38_p2 = scmp.gt.s32.totalorder %s37_s0, 0  ;;  %p199_p3 = scmp.lt.s32.totalorder %s37_s0, 511 }
   0xe   : > { %s466_s19 = smov (!%p198_p1, %s34_s19), %s464_s16 }
   0xf   : > { %s468_s0 = smov (!%p38_p2, %s37_s0), 0  ;;  %s45_s24 = scalar_lea.sflag [#allocation2], %s466_s19 }
  0x10   : > { %s470_s0 = smov (!%p199_p3, %s468_s0), 511 }
  0x11   : > { %s204_s20 = sshll.u32 %s470_s0, 4 }
  0x12   : > { %s43_s23 = scalar_lea.hbm %s460_s1, %s204_s20 }
  0x13   : > { %s260_s25 = scalar_lea.hbm %s43_s23, 16  ;;  %p263_p5 = scmp.lt.s32.totalorder %s43_s23, %s460_s1 }
  0x14   : > { %p261_p4 = scmp.ne.s32.totalorder %s43_s23, %s260_s25  ;;  %p264_p6 = scmp.lt.s32.totalorder %s262_s28, %s260_s25 }
  0x16   : > { %p265_p7 = por %p264_p6, %p263_p5 }
  0x18   : > { %p266_p8 = pnand %p265_p7, %p261_p4 }
  0x1a   : > { %269 = shalt.err (!%p266_p8)  }
  0x1b   : > { %s270_s5 = scalar_lea.vmem %s54_s18, 16  ;;  %s351_s6 = smov [#allocation5]  }
  0x1c   : > { %p271_p9 = scmp.ne.s32.totalorder %s54_s18, %s270_s5  ;;  %s272_s7 = sshll.u32 %s351_s6, 4  ;;  %s395_s7 = int_to_ptr.vmem [resolvable:$false] %s272_s7 }
  0x1d   : > { %s398_s8 = scalar_lea.vmem %s395_s7, 256  ;;  %p275_p10 = scmp.lt.s32.totalorder %s54_s18, %s395_s7 }
  0x1e   : > { %p276_p11 = scmp.lt.s32.totalorder %s398_s8, %s270_s5 }
  0x20   : > { %p277_p12 = por %p276_p11, %p275_p10 }
  0x22   : > { %p278_p13 = pnand %p277_p12, %p271_p9 }
  0x24   : > { %281 = shalt.err (!%p278_p13)  }
  0x25   : > { %56 = dma.hbm_to_vmem [thread:$0]  %s43_s23, 16, %s54_s18, %s45_s24 }
  0x26   : > { %s21_s12 = sadd.s32 1, %s344_s12  }
  0x27   : > { %p20_p0 = scmp.ge.s32.totalorder %s21_s12, 8 }
  0x28   :  { %s405_s9 = smov (%p20_p0), 0  }
  0x29   :  { %23 = sbr.rel (!%p20_p0) target bundleno = 6 (0x6), region = 59 }
  0x2e LB: > { %p63_p1 = scmp.lt.s32.totalorder %s348_s9, 0  ;;  %s64_s10 = ssub.s32 0, %s348_s9  ;;  %s348_s9 = sphi %s405_s9, %s60_s9  }
  0x2f   : > { %s205_s11 = smin.u32 %s348_s9, %s64_s10 }
  0x30   : > { %s66_s13 = sand.u32 7, %s205_s11  }
  0x31   : > { %s67_s14 = ssub.s32 0, %s66_s13 }
  0x32   : > { %s472_s14 = smov (!%p63_p1, %s67_s14), %s66_s13 }
  0x33   : > { %p207_p2 = scmp.lt.s32.totalorder %s472_s14, 0  ;;  %s73_s0 = sadd.s32 8, %s472_s14 }
  0x35   : > { %s474_s0 = smov (!%p207_p2, %s73_s0), %s472_s14 }
  0x36   : > { %s413_s12 = scalar_lea.sflag [#allocation2], %s474_s0 }
  0x37   : > { %338 = dma.done.wait %s413_s12, 16 }
  0x38   : > { %339 = vsyncadd %s413_s12, 4294967280  ;;  %s81_s15 = sadd.s32 8, %s348_s9  ;;  %s184_s19 = scalar_lea.vmem [#allocation5], %s348_s9 }
  0x39   : > { %p418_p3 = scmp.lt.s32.totalorder %s81_s15, 16  ;;  %s185_s20 = scalar_lea.vmem %s184_s19, 8 [#allocation5] }
  0x3a   : > { %s102_s21 = sshll.u32 %s185_s20, 4  ;;  %s103_s21 = int_to_ptr.vmem [resolvable:$true] %s102_s21 }
  0x3b   : > { %s228_s17 = scalar_select %p418_p3, [#allocation4], [#allocation13] }
  0x3c   : > { %s476_s15 = smov (!%p418_p3, %s81_s15), 0 }
  0x3d   : > { %s87_s18 = sld [smem:[%s228_s17 + %s476_s15]] }
  0x43   : > { %p88_p4 = scmp.gt.s32.totalorder %s87_s18, 0  ;;  %p209_p5 = scmp.lt.s32.totalorder %s87_s18, 511 }
  0x45   : > { %s478_s18 = smov (!%p88_p4, %s87_s18), 0 }
  0x46   : > { %s480_s18 = smov (!%p209_p5, %s478_s18), 511 }
  0x47   : > { %s214_s22 = sshll.u32 %s480_s18, 4 }
  0x48   : > { %s93_s25 = scalar_lea.hbm %s460_s1, %s214_s22 }
  0x49   : > { %s282_s26 = scalar_lea.hbm %s93_s25, 16  ;;  %p287_p9 = scmp.lt.s32.totalorder %s93_s25, %s460_s1 }
  0x4a   : > { %p283_p6 = scmp.ne.s32.totalorder %s93_s25, %s282_s26  ;;  %p288_p10 = scmp.lt.s32.totalorder %s262_s28, %s282_s26 }
  0x4c   : > { %p284_p7 = pnand %p283_p6, %p418_p3  ;;  %p289_p11 = por %p288_p10, %p287_p9 }
  0x4e   : > { %p285_p8 = pneg %p284_p7 }
  0x50   : > { %p290_p12 = pnand %p289_p11, %p285_p8 }
  0x52   : > { %293 = shalt.err (!%p290_p12)  }
  0x53   : > { %s294_s4 = scalar_lea.vmem %s103_s21, 16  ;;  %p301_p2 = scmp.lt.s32.totalorder %s103_s21, %s395_s7 }
  0x54   : > { %p295_p13 = scmp.ne.s32.totalorder %s103_s21, %s294_s4  ;;  %p302_p4 = scmp.lt.s32.totalorder %s398_s8, %s294_s4 }
  0x56   : > { %p296_p0 = pnand %p295_p13, %p418_p3  ;;  %p303_p5 = por %p302_p4, %p301_p2 }
  0x58   : > { %p297_p1 = pneg %p296_p0 }
  0x5a   : > { %p304_p6 = pnand %p303_p5, %p297_p1 }
  0x5c   : > { %307 = shalt.err (!%p304_p6)  }
  0x5d   : > { %230 = dma.hbm_to_vmem [thread:$0]  (%p418_p3), %s93_s25, 16, %s103_s21, %s413_s12 }
  0x5e   : > { %s60_s9 = sadd.s32 1, %s348_s9  }
  0x5f   : > { %p59_p7 = scmp.ge.s32.totalorder %s60_s9, 16 }
  0x60   :  { %p309_p8 = scmp.ne.s32.totalorder (%p59_p7), %s395_s7, %s398_s8  ;;  %p313_p9 = scmp.lt.s32.totalorder (%p59_p7), %s395_s7, %s395_s7 }
  0x61   :  { %62 = sbr.rel (!%p59_p7) target bundleno = 46 (0x2e), region = 70  ;;  %p314_p10 = scmp.lt.s32.totalorder (%p59_p7), %s398_s8, %s398_s8 }
  0x63   :  { %p315_p11 = por (%p59_p7), %p314_p10, %p313_p9 }
  0x65   :  { %p316_p12 = pnand (%p59_p7), %p315_p11, %p309_p8 }
  0x67   :  { %319 = shalt.err (!%p316_p12)
}
  0x68   :  { %s352_s5 = smov 128   ;;  %s353_s6 = smov 8  }
  0x69   :  { %117 = dma.vmem_to_hbm [thread:$0]  %s395_s7, 256, %s461_s2, [#allocation6], %s352_s5, %s352_s5, %s353_s6  }
  0x6a   :  { %340 = dma.done.wait [#allocation6], 256  }
  0x6b   :  { %341 = vsyncadd [#allocation6], 4294967040 }
  0x6c   :  { %121 = vsyncpa [#allocation6], 1 }
  0x6d   :  { %122 = vsyncmov [#allocation2] }
  0x70   :  { %s123_s1 = vpop.sfrf %122 }
  0x71   :  { %p215_p3 = scmp.ne.s32.totalorder %s123_s1, 0 }
  0x73   :  { %127 = shalt.err (%p215_p3)  }
  0x74   :  { %129 = vsyncmov [#allocation2 + $0x1] }
  0x77   :  { %s130_s28 = vpop.sfrf %129 }
  0x78   :  { %p216_p13 = scmp.ne.s32.totalorder %s130_s28, 0 }
  0x7a   :  { %134 = shalt.err (%p216_p13)  }
  0x7b   :  { %136 = vsyncmov [#allocation2 + $0x2] }
  0x7e   :  { %s137_s8 = vpop.sfrf %136 }
  0x7f   :  { %p217_p0 = scmp.ne.s32.totalorder %s137_s8, 0 }
  0x81   :  { %141 = shalt.err (%p217_p0)  }
  0x82   :  { %143 = vsyncmov [#allocation2 + $0x3] }
  0x85   :  { %s144_s9 = vpop.sfrf %143 }
  0x86   :  { %p218_p1 = scmp.ne.s32.totalorder %s144_s9, 0 }
  0x88   :  { %148 = shalt.err (%p218_p1)  }
  0x89   :  { %150 = vsyncmov [#allocation2 + $0x4] }
  0x8c   :  { %s151_s2 = vpop.sfrf %150 }
  0x8d   :  { %p219_p2 = scmp.ne.s32.totalorder %s151_s2, 0 }
  0x8f   :  { %155 = shalt.err (%p219_p2)  }
  0x90   :  { %157 = vsyncmov [#allocation2 + $0x5] }
  0x93   :  { %s158_s7 = vpop.sfrf %157 }
  0x94   :  { %p220_p4 = scmp.ne.s32.totalorder %s158_s7, 0 }
  0x96   :  { %162 = shalt.err (%p220_p4)  }
  0x97   :  { %164 = vsyncmov [#allocation2 + $0x6] }
  0x9a   :  { %s165_s13 = vpop.sfrf %164 }
  0x9b   :  { %p221_p5 = scmp.ne.s32.totalorder %s165_s13, 0 }
  0x9d   :  { %169 = shalt.err (%p221_p5)  }
  0x9e   :  { %171 = vsyncmov [#allocation2 + $0x7] }
  0xa1   :  { %s172_s14 = vpop.sfrf %171 }
  0xa2   :  { %p222_p6 = scmp.ne.s32.totalorder %s172_s14, 0 }
  0xa4   :  { %176 = shalt.err (%p222_p6)  }

</bundles_post_ra>
